<compile_context>
chip_gen: v6e
topology: v6e:2x2x1
jax: 0.10.0
libtpu: 0.0.40
codegen_flags: <defaults>
</compile_context>

<pallas_src>
import functools
import math

import jax
import jax.numpy as jnp
from jax import lax
from jax.experimental import pallas as pl
from jax.experimental.pallas import tpu as pltpu


def _pick_tile(n, cap=256):
    """Largest power-of-two tile <= cap that divides n (falls back to full dim)."""
    for c in (cap, 128, 64, 32, 16, 8):
        if c <= n and n % c == 0:
            return c
    return n  # full dim is always a legal block size


# ---------------------------------------------------------------------------
# Kernel 1: fused QKV projection -> head-major (B, H, T, hd) bf16 q / k / v.
# ---------------------------------------------------------------------------
def _qkv_proj_kernel(x_ref, wqkv_ref, bqkv_ref, q_ref, k_ref, v_ref, *, n_head):
    _, tp, C = x_ref.shape
    hd = C // n_head
    x = x_ref[0]                                               # (tp, C) bf16
    qkv = jnp.dot(x, wqkv_ref[...], preferred_element_type=jnp.float32)
    qkv = (qkv + bqkv_ref[...]).astype(jnp.bfloat16)           # bf16 once, right after bias
    # Head split paid once here (store side) so the attention kernel sees contiguous,
    # lane-dense (tq, hd) blocks for every head.
    for h in range(n_head):
        q_ref[0, h] = qkv[:, h * hd:(h + 1) * hd]
        k_ref[0, h] = qkv[:, C + h * hd:C + (h + 1) * hd]
        v_ref[0, h] = qkv[:, 2 * C + h * hd:2 * C + (h + 1) * hd]


# ---------------------------------------------------------------------------
# Kernel 2: flash attention (online softmax, causal tile skip) + fused output
#           projection.  Grid = (B, q_tiles, heads, kv_tiles).
# ---------------------------------------------------------------------------
def _flash_attn_kernel(q_ref, k_ref, v_ref, wproj_ref, bproj_ref, o_ref,
                       m_sc, l_sc, acc_sc, out_sc):
    qi = pl.program_id(1)
    h = pl.program_id(2)
    kv = pl.program_id(3)
    nh = pl.num_programs(2)

    @pl.when(jnp.logical_and(h == 0, kv == 0))
    def _init_out():                       # per (b, q_tile): reset output accumulator
        out_sc[...] = jnp.zeros_like(out_sc)

    @pl.when(kv == 0)
    def _init_head():                      # per head: reset online-softmax state
        m_sc[...] = jnp.full_like(m_sc, -jnp.inf)
        l_sc[...] = jnp.zeros_like(l_sc)
        acc_sc[...] = jnp.zeros_like(acc_sc)

    def _scores():
        q = q_ref[0, 0]                    # (tq, hd) bf16, 1/sqrt(hd) folded into Wq
        k = k_ref[0, 0]                    # (tk, hd) bf16
        return lax.dot_general(q, k, (((1,), (1,)), ((), ())),
                               preferred_element_type=jnp.float32)   # (tq, tk) f32

    def _online_update(s):
        v = v_ref[0, 0]                    # (tk, hd) bf16
        m_prev = m_sc[...]
        m_new = jnp.maximum(m_prev, jnp.max(s, axis=-1, keepdims=True))
        alpha = jnp.exp(m_prev - m_new)
        p = jnp.exp(s - m_new)
        l_sc[...] = alpha * l_sc[...] + jnp.sum(p, axis=-1, keepdims=True)
        acc_sc[...] = alpha * acc_sc[...] + lax.dot_general(
            p.astype(jnp.bfloat16), v, (((1,), (0,)), ((), ())),
            preferred_element_type=jnp.float32)
        m_sc[...] = m_new

    # Strictly-below-diagonal kv tile: fully valid, no mask built / applied.
    @pl.when(kv < qi)
    def _full_tile():
        _online_update(_scores())

    # Diagonal kv tile: triangular mask, then per-head finalize (ctx @ Wproj_h).
    # (kv tiles above the diagonal are skipped entirely: ~2x flops/exp saving.)
    @pl.when(kv == qi)
    def _diag_tile():
        s = _scores()
        tq, tk = s.shape
        row = lax.broadcasted_iota(jnp.int32, (tq, tk), 0)
        col = lax.broadcasted_iota(jnp.int32, (tq, tk), 1)
        _online_update(jnp.where(row >= col, s, jnp.float32(-1e30)))

        # Head epilogue: normalize (EUP approx reciprocal) and project into the
        # shared per-(b, q_tile) f32 output accumulator.
        ctx = (acc_sc[...] * pl.reciprocal(l_sc[...], approx=True)).astype(jnp.bfloat16)
        out_sc[...] += jnp.dot(ctx, wproj_ref[0], preferred_element_type=jnp.float32)

        @pl.when(h == nh - 1)
        def _write_out():                  # single lane-dense (tq, C) store
            o_ref[0] = (out_sc[...] + bproj_ref[...]).astype(o_ref.dtype)


# ---------------------------------------------------------------------------
# Wrapper
# ---------------------------------------------------------------------------
@functools.partial(jax.jit, static_argnames=("n_head",))
def causal_self_attention_pallas(x, wqkv_t, bqkv, wproj_h, bproj, *, n_head):
    """x: [B, T, C]; wqkv_t: [C, 3C] bf16 (scale folded into q cols);
    bqkv: [1, 3C] f32 (q part pre-scaled); wproj_h: [H, hd, C] bf16; bproj: [1, C] f32."""
    B, T, C = x.shape
    assert C % n_head == 0
    hd = C // n_head
    out_dtype = x.dtype
    xc = x.astype(jnp.bfloat16)            # bf16 activations at the kernel boundary

    tp = _pick_tile(T)                     # projection row tile
    tq = _pick_tile(T)                     # attention q tile == kv tile (square tiles)
    tk = tq
    n_q = T // tq
    n_kv = T // tk

    # ---------------- QKV projection ----------------
    bytes_qkv_out = 3 * B * n_head * T * hd * 2
    ce_proj = pl.CostEstimate(
        flops=2 * B * T * C * 3 * C,
        transcendentals=0,
        bytes_accessed=B * T * C * 2 + wqkv_t.size * 2 + bqkv.size * 4 + bytes_qkv_out)

    q, k, v = pl.pallas_call(
        functools.partial(_qkv_proj_kernel, n_head=n_head),
        out_shape=(
            jax.ShapeDtypeStruct((B, n_head, T, hd), jnp.bfloat16),
            jax.ShapeDtypeStruct((B, n_head, T, hd), jnp.bfloat16),
            jax.ShapeDtypeStruct((B, n_head, T, hd), jnp.bfloat16),
        ),
        grid_spec=pltpu.PrefetchScalarGridSpec(
            num_scalar_prefetch=0,
            grid=(B, T // tp),
            in_specs=[
                pl.BlockSpec((1, tp, C), lambda b, t: (b, t, 0)),      # x tile
                pl.BlockSpec((C, 3 * C), lambda b, t: (0, 0)),         # Wqkv^T (resident)
                pl.BlockSpec((1, 3 * C), lambda b, t: (0, 0)),         # bqkv   (resident)
            ],
            out_specs=[
                pl.BlockSpec((1, n_head, tp, hd), lambda b, t: (b, 0, t, 0)),
                pl.BlockSpec((1, n_head, tp, hd), lambda b, t: (b, 0, t, 0)),
                pl.BlockSpec((1, n_head, tp, hd), lambda b, t: (b, 0, t, 0)),
            ],
        ),
        compiler_params=pltpu.CompilerParams(
            dimension_semantics=("parallel", "parallel"),
            vmem_limit_bytes=32 * 1024 * 1024,
        ),
        cost_estimate=ce_proj,
    )(xc, wqkv_t, bqkv)

    # ---------------- Flash attention + output projection ----------------
    n_tiles_done = n_q * (n_q + 1) // 2    # causal: tiles actually computed per (b, h)
    ce_attn = pl.CostEstimate(
        flops=2 * 2 * B * n_head * n_tiles_done * tq * tk * hd + 2 * B * T * C * C,
        transcendentals=B * n_head * n_tiles_done * tq * tk,
        bytes_accessed=bytes_qkv_out + wproj_h.size * 2 + bproj.size * 4
        + B * T * C * jnp.dtype(out_dtype).itemsize)

    out = pl.pallas_call(
        _flash_attn_kernel,
        out_shape=jax.ShapeDtypeStruct((B, T, C), out_dtype),
        grid_spec=pltpu.PrefetchScalarGridSpec(
            num_scalar_prefetch=0,
            grid=(B, n_q, n_head, n_kv),
            in_specs=[
                pl.BlockSpec((1, 1, tq, hd), lambda b, qi, h, kv: (b, h, qi, 0)),
                # clamp kv index above the diagonal -> no DMA for skipped tiles
                pl.BlockSpec((1, 1, tk, hd),
                             lambda b, qi, h, kv: (b, h, jnp.minimum(kv, qi), 0)),
                pl.BlockSpec((1, 1, tk, hd),
                             lambda b, qi, h, kv: (b, h, jnp.minimum(kv, qi), 0)),
                pl.BlockSpec((1, hd, C), lambda b, qi, h, kv: (h, 0, 0)),   # Wproj_h
                pl.BlockSpec((1, C), lambda b, qi, h, kv: (0, 0)),          # bproj (resident)
            ],
            out_specs=pl.BlockSpec((1, tq, C), lambda b, qi, h, kv: (b, qi, 0)),
            scratch_shapes=[
                pltpu.VMEM((tq, 1), jnp.float32),    # running max
                pltpu.VMEM((tq, 1), jnp.float32),    # running sum
                pltpu.VMEM((tq, hd), jnp.float32),   # PV accumulator (per head)
                pltpu.VMEM((tq, C), jnp.float32),    # output-projection accumulator
            ],
        ),
        compiler_params=pltpu.CompilerParams(
            dimension_semantics=("parallel", "parallel", "arbitrary", "arbitrary"),
            vmem_limit_bytes=32 * 1024 * 1024,
        ),
        cost_estimate=ce_attn,
    )(q, k, v, wproj_h, bproj)
    return out


def prepare_params(w_attn, b_attn, w_proj, b_proj, n_head, compute_dtype=jnp.bfloat16):
    """Done ONCE at parameter-setup time: transpose PyTorch Linear weights
    [out, in] -> [in, out], fold 1/sqrt(hd) into the q columns (and q bias),
    reshape Wproj^T to head-major (H, hd, C), and cast weights to bf16."""
    w_attn = jnp.asarray(w_attn, jnp.float32)
    b_attn = jnp.asarray(b_attn, jnp.float32)
    w_proj = jnp.asarray(w_proj, jnp.float32)
    b_proj = jnp.asarray(b_proj, jnp.float32)

    C = w_attn.shape[1]
    hd = C // n_head
    scale = 1.0 / math.sqrt(hd)

    wqkv_t = w_attn.T                                            # (C, 3C)
    wqkv_t = jnp.concatenate(
        [wqkv_t[:, :C] * scale, wqkv_t[:, C:]], axis=1).astype(compute_dtype)
    bqkv = jnp.concatenate([b_attn[:C] * scale, b_attn[C:]]).reshape(1, -1)
    bqkv = bqkv.astype(jnp.float32)

    wproj_h = w_proj.T.reshape(n_head, hd, C).astype(compute_dtype)   # (H, hd, C)
    bproj = b_proj.reshape(1, -1).astype(jnp.float32)
    return wqkv_t, bqkv, wproj_h, bproj


def causal_self_attention_forward(x, params, *, n_head, output_attentions=False):
    """Mirrors CausalSelfAttention.forward: returns (attn_output, attn_weights)."""
    out = causal_self_attention_pallas(x, *params, n_head=n_head)
    # TODO(synk): output_attentions=True (materializing the (B, n_head, T, T) softmax
    # weights) is not produced by the fused flash kernel; only the attn_weights=None
    # path (config.output_attentions=False) is implemented.
    return out, None


def causal_self_attention_reference(x, w_attn, b_attn, w_proj, b_proj, n_head):
    """Pure-JAX f32 reference matching the PyTorch module."""
    B, T, C = x.shape
    hd = C // n_head
    qkv = jnp.einsum("btc,oc->bto", x, w_attn) + b_attn
    q, k, v = jnp.split(qkv, 3, axis=-1)

    def to_heads(t):
        return t.reshape(B, T, n_head, hd).transpose(0, 2, 1, 3)

    q, k, v = to_heads(q), to_heads(k), to_heads(v)
    s = jnp.einsum("bhtd,bhsd->bhts", q, k) * (1.0 / math.sqrt(hd))
    mask = jnp.tril(jnp.ones((T, T), dtype=bool))
    s = jnp.where(mask[None, None], s, -jnp.inf)
    p = jax.nn.softmax(s, axis=-1)
    ctx = jnp.einsum("bhts,bhsd->bhtd", p, v)
    ctx = ctx.transpose(0, 2, 1, 3).reshape(B, T, C)
    return jnp.einsum("btc,oc->bto", ctx, w_proj) + b_proj


if __name__ == "__main__":
    # Small config consistent with the module: n_embd=32, n_head=4, T=8 (<= block_size).
    B, T, n_embd, n_head = 2, 8, 32, 4

    key = jax.random.PRNGKey(0)
    kx, k1, k2, k3, k4 = jax.random.split(key, 5)

    x = jax.random.normal(kx, (B, T, n_embd), dtype=jnp.float32)
    # PyTorch nn.Linear weight layout: [out_features, in_features].
    w_attn = jax.random.normal(k1, (3 * n_embd, n_embd), dtype=jnp.float32) * 0.1
    b_attn = jax.random.normal(k2, (3 * n_embd,), dtype=jnp.float32) * 0.1
    w_proj = jax.random.normal(k3, (n_embd, n_embd), dtype=jnp.float32) * 0.1
    b_proj = jax.random.normal(k4, (n_embd,), dtype=jnp.float32) * 0.1

    params = prepare_params(w_attn, b_attn, w_proj, b_proj, n_head)

    out, attn_w = causal_self_attention_forward(x, params, n_head=n_head)
    out = jax.block_until_ready(out)

    ref = causal_self_attention_reference(x, w_attn, b_attn, w_proj, b_proj, n_head)
    assert out.shape == (B, T, n_embd)
    assert attn_w is None
    max_err = float(jnp.max(jnp.abs(out - ref)))
    # bf16 matmul inputs with f32 accumulation -> loosened tolerance vs the f32 reference.
    assert jnp.allclose(out, ref, atol=2e-2, rtol=2e-2), \
        f"mismatch vs reference (max abs err {max_err})"

    print("KERNEL_OK")
</pallas_src>

<mosaic_0001>
module attributes {stable_mosaic.version = 11 : i64} {
  func.func @_qkv_proj_kernel(%arg0: i32, %arg1: i32, %arg2: memref<1x8x32xbf16, #tpu.memory_space<vmem>>, %arg3: memref<32x96xbf16, #tpu.memory_space<vmem>>, %arg4: memref<1x96xf32, #tpu.memory_space<vmem>>, %arg5: memref<1x4x8x8xbf16, #tpu.memory_space<vmem>>, %arg6: memref<1x4x8x8xbf16, #tpu.memory_space<vmem>>, %arg7: memref<1x4x8x8xbf16, #tpu.memory_space<vmem>>) attributes {dimension_semantics = [#tpu.dimension_semantics<parallel>, #tpu.dimension_semantics<parallel>], iteration_bounds = array<i64: 2, 1>, scalar_prefetch = 0 : i64, scratch_operands = 0 : i64, tpu.core_type = #tpu.core_type<tc>, window_params = [{transform_indices = @transform_0, window_bounds = array<i64: 1, 8, 32>}, {pipeline_mode = #tpu.pipeline_mode<synchronous>, transform_indices = @transform_1, window_bounds = array<i64: 32, 96>}, {pipeline_mode = #tpu.pipeline_mode<synchronous>, transform_indices = @transform_2, window_bounds = array<i64: 1, 96>}, {transform_indices = @transform_3, window_bounds = array<i64: 1, 4, 8, 8>}, {transform_indices = @transform_4, window_bounds = array<i64: 1, 4, 8, 8>}, {transform_indices = @transform_5, window_bounds = array<i64: 1, 4, 8, 8>}]} {
    %c0 = arith.constant 0 : index
    %c0_0 = arith.constant 0 : index
    %c0_1 = arith.constant 0 : index
    %0 = vector.load %arg2[%c0, %c0_0, %c0_1] : memref<1x8x32xbf16, #tpu.memory_space<vmem>>, vector<1x8x32xbf16>
    %1 = vector.shape_cast %0 : vector<1x8x32xbf16> to vector<8x32xbf16>
    %c0_2 = arith.constant 0 : index
    %c0_3 = arith.constant 0 : index
    %2 = vector.load %arg3[%c0_2, %c0_3] : memref<32x96xbf16, #tpu.memory_space<vmem>>, vector<32x96xbf16>
    %cst = arith.constant dense<0.000000e+00> : vector<8x96xf32>
    %3 = tpu.matmul %1, %2, %cst {dimension_numbers = #tpu.dot_dimension_numbers<[1], [0], [0], [1], [0, 0, 1, 1], [], []>} : vector<8x32xbf16>, vector<32x96xbf16>, vector<8x96xf32> -> vector<8x96xf32>
    %c0_4 = arith.constant 0 : index
    %c0_5 = arith.constant 0 : index
    %4 = vector.load %arg4[%c0_4, %c0_5] : memref<1x96xf32, #tpu.memory_space<vmem>>, vector<1x96xf32>
    %5 = vector.broadcast %4 : vector<1x96xf32> to vector<8x96xf32>
    %6 = arith.addf %3, %5 : vector<8x96xf32>
    %7 = arith.truncf %6 : vector<8x96xf32> to vector<8x96xbf16>
    %8 = vector.extract_strided_slice %7 {offsets = [0, 0], sizes = [8, 8], strides = [1, 1]} : vector<8x96xbf16> to vector<8x8xbf16>
    %c0_6 = arith.constant 0 : index
    %c0_7 = arith.constant 0 : index
    %c0_8 = arith.constant 0 : index
    %c0_9 = arith.constant 0 : index
    %9 = vector.load %arg5[%c0_6, %c0_7, %c0_8, %c0_9] : memref<1x4x8x8xbf16, #tpu.memory_space<vmem>>, vector<1x1x8x8xbf16>
    %10 = vector.shape_cast %9 : vector<1x1x8x8xbf16> to vector<8x8xbf16>
    %11 = vector.shape_cast %8 : vector<8x8xbf16> to vector<1x1x8x8xbf16>
    tpu.vector_store %arg5[%c0_6, %c0_7, %c0_8, %c0_9], %11 {strides = array<i32>} : memref<1x4x8x8xbf16, #tpu.memory_space<vmem>>, vector<1x1x8x8xbf16>,
    %12 = vector.extract_strided_slice %7 {offsets = [0, 32], sizes = [8, 8], strides = [1, 1]} : vector<8x96xbf16> to vector<8x8xbf16>
    %c0_10 = arith.constant 0 : index
    %c0_11 = arith.constant 0 : index
    %c0_12 = arith.constant 0 : index
    %c0_13 = arith.constant 0 : index
    %13 = vector.load %arg6[%c0_10, %c0_11, %c0_12, %c0_13] : memref<1x4x8x8xbf16, #tpu.memory_space<vmem>>, vector<1x1x8x8xbf16>
    %14 = vector.shape_cast %13 : vector<1x1x8x8xbf16> to vector<8x8xbf16>
    %15 = vector.shape_cast %12 : vector<8x8xbf16> to vector<1x1x8x8xbf16>
    tpu.vector_store %arg6[%c0_10, %c0_11, %c0_12, %c0_13], %15 {strides = array<i32>} : memref<1x4x8x8xbf16, #tpu.memory_space<vmem>>, vector<1x1x8x8xbf16>,
    %16 = vector.extract_strided_slice %7 {offsets = [0, 64], sizes = [8, 8], strides = [1, 1]} : vector<8x96xbf16> to vector<8x8xbf16>
    %c0_14 = arith.constant 0 : index
    %c0_15 = arith.constant 0 : index
    %c0_16 = arith.constant 0 : index
    %c0_17 = arith.constant 0 : index
    %17 = vector.load %arg7[%c0_14, %c0_15, %c0_16, %c0_17] : memref<1x4x8x8xbf16, #tpu.memory_space<vmem>>, vector<1x1x8x8xbf16>
    %18 = vector.shape_cast %17 : vector<1x1x8x8xbf16> to vector<8x8xbf16>
    %19 = vector.shape_cast %16 : vector<8x8xbf16> to vector<1x1x8x8xbf16>
    tpu.vector_store %arg7[%c0_14, %c0_15, %c0_16, %c0_17], %19 {strides = array<i32>} : memref<1x4x8x8xbf16, #tpu.memory_space<vmem>>, vector<1x1x8x8xbf16>,
    %20 = vector.extract_strided_slice %7 {offsets = [0, 8], sizes = [8, 8], strides = [1, 1]} : vector<8x96xbf16> to vector<8x8xbf16>
    %c0_18 = arith.constant 0 : index
    %c1 = arith.constant 1 : index
    %c0_19 = arith.constant 0 : index
    %c0_20 = arith.constant 0 : index
    %21 = vector.load %arg5[%c0_18, %c1, %c0_19, %c0_20] : memref<1x4x8x8xbf16, #tpu.memory_space<vmem>>, vector<1x1x8x8xbf16>
    %22 = vector.shape_cast %21 : vector<1x1x8x8xbf16> to vector<8x8xbf16>
    %23 = vector.shape_cast %20 : vector<8x8xbf16> to vector<1x1x8x8xbf16>
    tpu.vector_store %arg5[%c0_18, %c1, %c0_19, %c0_20], %23 {strides = array<i32>} : memref<1x4x8x8xbf16, #tpu.memory_space<vmem>>, vector<1x1x8x8xbf16>,
    %24 = vector.extract_strided_slice %7 {offsets = [0, 40], sizes = [8, 8], strides = [1, 1]} : vector<8x96xbf16> to vector<8x8xbf16>
    %c0_21 = arith.constant 0 : index
    %c1_22 = arith.constant 1 : index
    %c0_23 = arith.constant 0 : index
    %c0_24 = arith.constant 0 : index
    %25 = vector.load %arg6[%c0_21, %c1_22, %c0_23, %c0_24] : memref<1x4x8x8xbf16, #tpu.memory_space<vmem>>, vector<1x1x8x8xbf16>
    %26 = vector.shape_cast %25 : vector<1x1x8x8xbf16> to vector<8x8xbf16>
    %27 = vector.shape_cast %24 : vector<8x8xbf16> to vector<1x1x8x8xbf16>
    tpu.vector_store %arg6[%c0_21, %c1_22, %c0_23, %c0_24], %27 {strides = array<i32>} : memref<1x4x8x8xbf16, #tpu.memory_space<vmem>>, vector<1x1x8x8xbf16>,
    %28 = vector.extract_strided_slice %7 {offsets = [0, 72], sizes = [8, 8], strides = [1, 1]} : vector<8x96xbf16> to vector<8x8xbf16>
    %c0_25 = arith.constant 0 : index
    %c1_26 = arith.constant 1 : index
    %c0_27 = arith.constant 0 : index
    %c0_28 = arith.constant 0 : index
    %29 = vector.load %arg7[%c0_25, %c1_26, %c0_27, %c0_28] : memref<1x4x8x8xbf16, #tpu.memory_space<vmem>>, vector<1x1x8x8xbf16>
    %30 = vector.shape_cast %29 : vector<1x1x8x8xbf16> to vector<8x8xbf16>
    %31 = vector.shape_cast %28 : vector<8x8xbf16> to vector<1x1x8x8xbf16>
    tpu.vector_store %arg7[%c0_25, %c1_26, %c0_27, %c0_28], %31 {strides = array<i32>} : memref<1x4x8x8xbf16, #tpu.memory_space<vmem>>, vector<1x1x8x8xbf16>,
    %32 = vector.extract_strided_slice %7 {offsets = [0, 16], sizes = [8, 8], strides = [1, 1]} : vector<8x96xbf16> to vector<8x8xbf16>
    %c0_29 = arith.constant 0 : index
    %c2 = arith.constant 2 : index
    %c0_30 = arith.constant 0 : index
    %c0_31 = arith.constant 0 : index
    %33 = vector.load %arg5[%c0_29, %c2, %c0_30, %c0_31] : memref<1x4x8x8xbf16, #tpu.memory_space<vmem>>, vector<1x1x8x8xbf16>
    %34 = vector.shape_cast %33 : vector<1x1x8x8xbf16> to vector<8x8xbf16>
    %35 = vector.shape_cast %32 : vector<8x8xbf16> to vector<1x1x8x8xbf16>
    tpu.vector_store %arg5[%c0_29, %c2, %c0_30, %c0_31], %35 {strides = array<i32>} : memref<1x4x8x8xbf16, #tpu.memory_space<vmem>>, vector<1x1x8x8xbf16>,
    %36 = vector.extract_strided_slice %7 {offsets = [0, 48], sizes = [8, 8], strides = [1, 1]} : vector<8x96xbf16> to vector<8x8xbf16>
    %c0_32 = arith.constant 0 : index
    %c2_33 = arith.constant 2 : index
    %c0_34 = arith.constant 0 : index
    %c0_35 = arith.constant 0 : index
    %37 = vector.load %arg6[%c0_32, %c2_33, %c0_34, %c0_35] : memref<1x4x8x8xbf16, #tpu.memory_space<vmem>>, vector<1x1x8x8xbf16>
    %38 = vector.shape_cast %37 : vector<1x1x8x8xbf16> to vector<8x8xbf16>
    %39 = vector.shape_cast %36 : vector<8x8xbf16> to vector<1x1x8x8xbf16>
    tpu.vector_store %arg6[%c0_32, %c2_33, %c0_34, %c0_35], %39 {strides = array<i32>} : memref<1x4x8x8xbf16, #tpu.memory_space<vmem>>, vector<1x1x8x8xbf16>,
    %40 = vector.extract_strided_slice %7 {offsets = [0, 80], sizes = [8, 8], strides = [1, 1]} : vector<8x96xbf16> to vector<8x8xbf16>
    %c0_36 = arith.constant 0 : index
    %c2_37 = arith.constant 2 : index
    %c0_38 = arith.constant 0 : index
    %c0_39 = arith.constant 0 : index
    %41 = vector.load %arg7[%c0_36, %c2_37, %c0_38, %c0_39] : memref<1x4x8x8xbf16, #tpu.memory_space<vmem>>, vector<1x1x8x8xbf16>
    %42 = vector.shape_cast %41 : vector<1x1x8x8xbf16> to vector<8x8xbf16>
    %43 = vector.shape_cast %40 : vector<8x8xbf16> to vector<1x1x8x8xbf16>
    tpu.vector_store %arg7[%c0_36, %c2_37, %c0_38, %c0_39], %43 {strides = array<i32>} : memref<1x4x8x8xbf16, #tpu.memory_space<vmem>>, vector<1x1x8x8xbf16>,
    %44 = vector.extract_strided_slice %7 {offsets = [0, 24], sizes = [8, 8], strides = [1, 1]} : vector<8x96xbf16> to vector<8x8xbf16>
    %c0_40 = arith.constant 0 : index
    %c3 = arith.constant 3 : index
    %c0_41 = arith.constant 0 : index
    %c0_42 = arith.constant 0 : index
    %45 = vector.load %arg5[%c0_40, %c3, %c0_41, %c0_42] : memref<1x4x8x8xbf16, #tpu.memory_space<vmem>>, vector<1x1x8x8xbf16>
    %46 = vector.shape_cast %45 : vector<1x1x8x8xbf16> to vector<8x8xbf16>
    %47 = vector.shape_cast %44 : vector<8x8xbf16> to vector<1x1x8x8xbf16>
    tpu.vector_store %arg5[%c0_40, %c3, %c0_41, %c0_42], %47 {strides = array<i32>} : memref<1x4x8x8xbf16, #tpu.memory_space<vmem>>, vector<1x1x8x8xbf16>,
    %48 = vector.extract_strided_slice %7 {offsets = [0, 56], sizes = [8, 8], strides = [1, 1]} : vector<8x96xbf16> to vector<8x8xbf16>
    %c0_43 = arith.constant 0 : index
    %c3_44 = arith.constant 3 : index
    %c0_45 = arith.constant 0 : index
    %c0_46 = arith.constant 0 : index
    %49 = vector.load %arg6[%c0_43, %c3_44, %c0_45, %c0_46] : memref<1x4x8x8xbf16, #tpu.memory_space<vmem>>, vector<1x1x8x8xbf16>
    %50 = vector.shape_cast %49 : vector<1x1x8x8xbf16> to vector<8x8xbf16>
    %51 = vector.shape_cast %48 : vector<8x8xbf16> to vector<1x1x8x8xbf16>
    tpu.vector_store %arg6[%c0_43, %c3_44, %c0_45, %c0_46], %51 {strides = array<i32>} : memref<1x4x8x8xbf16, #tpu.memory_space<vmem>>, vector<1x1x8x8xbf16>,
    %52 = vector.extract_strided_slice %7 {offsets = [0, 88], sizes = [8, 8], strides = [1, 1]} : vector<8x96xbf16> to vector<8x8xbf16>
    %c0_47 = arith.constant 0 : index
    %c3_48 = arith.constant 3 : index
    %c0_49 = arith.constant 0 : index
    %c0_50 = arith.constant 0 : index
    %53 = vector.load %arg7[%c0_47, %c3_48, %c0_49, %c0_50] : memref<1x4x8x8xbf16, #tpu.memory_space<vmem>>, vector<1x1x8x8xbf16>
    %54 = vector.shape_cast %53 : vector<1x1x8x8xbf16> to vector<8x8xbf16>
    %55 = vector.shape_cast %52 : vector<8x8xbf16> to vector<1x1x8x8xbf16>
    tpu.vector_store %arg7[%c0_47, %c3_48, %c0_49, %c0_50], %55 {strides = array<i32>} : memref<1x4x8x8xbf16, #tpu.memory_space<vmem>>, vector<1x1x8x8xbf16>,
    return
  }
  func.func @transform_0(%arg0: i32, %arg1: i32) -> (i32, i32, i32) {
    %c0_i32 = arith.constant 0 : i32
    %c0_i32_0 = arith.constant 0 : i32
    return %arg0, %arg1, %c0_i32 : i32, i32, i32
  }
  func.func @transform_1(%arg0: i32, %arg1: i32) -> (i32, i32) {
    %c0_i32 = arith.constant 0 : i32
    %c0_i32_0 = arith.constant 0 : i32
    %c0_i32_1 = arith.constant 0 : i32
    return %c0_i32, %c0_i32_0 : i32, i32
  }
  func.func @transform_2(%arg0: i32, %arg1: i32) -> (i32, i32) {
    %c0_i32 = arith.constant 0 : i32
    %c0_i32_0 = arith.constant 0 : i32
    %c0_i32_1 = arith.constant 0 : i32
    return %c0_i32, %c0_i32_0 : i32, i32
  }
  func.func @transform_3(%arg0: i32, %arg1: i32) -> (i32, i32, i32, i32) {
    %c0_i32 = arith.constant 0 : i32
    %c0_i32_0 = arith.constant 0 : i32
    %c0_i32_1 = arith.constant 0 : i32
    return %arg0, %c0_i32, %arg1, %c0_i32_0 : i32, i32, i32, i32
  }
  func.func @transform_4(%arg0: i32, %arg1: i32) -> (i32, i32, i32, i32) {
    %c0_i32 = arith.constant 0 : i32
    %c0_i32_0 = arith.constant 0 : i32
    %c0_i32_1 = arith.constant 0 : i32
    return %arg0, %c0_i32, %arg1, %c0_i32_0 : i32, i32, i32, i32
  }
  func.func @transform_5(%arg0: i32, %arg1: i32) -> (i32, i32, i32, i32) {
    %c0_i32 = arith.constant 0 : i32
    %c0_i32_0 = arith.constant 0 : i32
    %c0_i32_1 = arith.constant 0 : i32
    return %arg0, %c0_i32, %arg1, %c0_i32_0 : i32, i32, i32, i32
  }
}

module attributes {stable_mosaic.version = 11 : i64} {
  func.func @_flash_attn_kernel(%arg0: i32, %arg1: i32, %arg2: i32, %arg3: i32, %arg4: memref<1x1x8x8xbf16, #tpu.memory_space<vmem>>, %arg5: memref<1x1x8x8xbf16, #tpu.memory_space<vmem>>, %arg6: memref<1x1x8x8xbf16, #tpu.memory_space<vmem>>, %arg7: memref<1x8x32xbf16, #tpu.memory_space<vmem>>, %arg8: memref<1x32xf32, #tpu.memory_space<vmem>>, %arg9: memref<1x8x32xf32, #tpu.memory_space<vmem>>, %arg10: memref<8x1xf32, #tpu.memory_space<vmem>>, %arg11: memref<8x1xf32, #tpu.memory_space<vmem>>, %arg12: memref<8x8xf32, #tpu.memory_space<vmem>>, %arg13: memref<8x32xf32, #tpu.memory_space<vmem>>) attributes {dimension_semantics = [#tpu.dimension_semantics<parallel>, #tpu.dimension_semantics<parallel>, #tpu.dimension_semantics<arbitrary>, #tpu.dimension_semantics<arbitrary>], iteration_bounds = array<i64: 2, 1, 4, 1>, scalar_prefetch = 0 : i64, scratch_operands = 4 : i64, tpu.core_type = #tpu.core_type<tc>, window_params = [{transform_indices = @transform_0, window_bounds = array<i64: 1, 1, 8, 8>}, {transform_indices = @transform_1, window_bounds = array<i64: 1, 1, 8, 8>}, {transform_indices = @transform_2, window_bounds = array<i64: 1, 1, 8, 8>}, {transform_indices = @transform_3, window_bounds = array<i64: 1, 8, 32>}, {pipeline_mode = #tpu.pipeline_mode<synchronous>, transform_indices = @transform_4, window_bounds = array<i64: 1, 32>}, {transform_indices = @transform_5, window_bounds = array<i64: 1, 8, 32>}]} {
    %c0_i32 = arith.constant 0 : i32
    %0 = arith.cmpi eq, %arg2, %c0_i32 : i32
    %c0_i32_0 = arith.constant 0 : i32
    %1 = arith.cmpi eq, %arg3, %c0_i32_0 : i32
    %2 = arith.andi %0, %1 : i1
    %3 = arith.extui %2 : i1 to i32
    %c0_i32_1 = arith.constant 0 : i32
    %4 = arith.cmpi ne, %3, %c0_i32_1 : i32
    scf.if %4 {
      %cst = arith.constant 0.000000e+00 : f32
      %14 = vector.broadcast %cst : f32 to vector<8x32xf32>
      %c0 = arith.constant 0 : index
      %c0_6 = arith.constant 0 : index
      %15 = vector.load %arg13[%c0, %c0_6] : memref<8x32xf32, #tpu.memory_space<vmem>>, vector<8x32xf32>
      tpu.vector_store %arg13[%c0, %c0_6], %14 {strides = array<i32>} : memref<8x32xf32, #tpu.memory_space<vmem>>, vector<8x32xf32>,
    } else {
    }
    %c0_i32_2 = arith.constant 0 : i32
    %5 = arith.cmpi eq, %arg3, %c0_i32_2 : i32
    %6 = arith.extui %5 : i1 to i32
    %c0_i32_3 = arith.constant 0 : i32
    %7 = arith.cmpi ne, %6, %c0_i32_3 : i32
    scf.if %7 {
      %cst = arith.constant 0xFF800000 : f32
      %14 = vector.broadcast %cst : f32 to vector<8x1xf32>
      %c0 = arith.constant 0 : index
      %c0_6 = arith.constant 0 : index
      %15 = vector.load %arg10[%c0, %c0_6] : memref<8x1xf32, #tpu.memory_space<vmem>>, vector<8x1xf32>
      tpu.vector_store %arg10[%c0, %c0_6], %14 {strides = array<i32>} : memref<8x1xf32, #tpu.memory_space<vmem>>, vector<8x1xf32>,
      %cst_7 = arith.constant 0.000000e+00 : f32
      %16 = vector.broadcast %cst_7 : f32 to vector<8x1xf32>
      %c0_8 = arith.constant 0 : index
      %c0_9 = arith.constant 0 : index
      %17 = vector.load %arg11[%c0_8, %c0_9] : memref<8x1xf32, #tpu.memory_space<vmem>>, vector<8x1xf32>
      tpu.vector_store %arg11[%c0_8, %c0_9], %16 {strides = array<i32>} : memref<8x1xf32, #tpu.memory_space<vmem>>, vector<8x1xf32>,
      %cst_10 = arith.constant 0.000000e+00 : f32
      %18 = vector.broadcast %cst_10 : f32 to vector<8x8xf32>
      %c0_11 = arith.constant 0 : index
      %c0_12 = arith.constant 0 : index
      %19 = vector.load %arg12[%c0_11, %c0_12] : memref<8x8xf32, #tpu.memory_space<vmem>>, vector<8x8xf32>
      tpu.vector_store %arg12[%c0_11, %c0_12], %18 {strides = array<i32>} : memref<8x8xf32, #tpu.memory_space<vmem>>, vector<8x8xf32>,
    } else {
    }
    %8 = arith.cmpi slt, %arg3, %arg1 : i32
    %9 = arith.extui %8 : i1 to i32
    %c0_i32_4 = arith.constant 0 : i32
    %10 = arith.cmpi ne, %9, %c0_i32_4 : i32
    scf.if %10 {
      %c0 = arith.constant 0 : index
      %c0_6 = arith.constant 0 : index
      %c0_7 = arith.constant 0 : index
      %c0_8 = arith.constant 0 : index
      %14 = vector.load %arg4[%c0, %c0_6, %c0_7, %c0_8] : memref<1x1x8x8xbf16, #tpu.memory_space<vmem>>, vector<1x1x8x8xbf16>
      %15 = vector.shape_cast %14 : vector<1x1x8x8xbf16> to vector<8x8xbf16>
      %c0_9 = arith.constant 0 : index
      %c0_10 = arith.constant 0 : index
      %c0_11 = arith.constant 0 : index
      %c0_12 = arith.constant 0 : index
      %16 = vector.load %arg5[%c0_9, %c0_10, %c0_11, %c0_12] : memref<1x1x8x8xbf16, #tpu.memory_space<vmem>>, vector<1x1x8x8xbf16>
      %17 = vector.shape_cast %16 : vector<1x1x8x8xbf16> to vector<8x8xbf16>
      %cst = arith.constant dense<0.000000e+00> : vector<8x8xf32>
      %18 = tpu.matmul %15, %17, %cst {dimension_numbers = #tpu.dot_dimension_numbers<[1], [1], [0], [0], [0, 0, 1, 0], [], []>} : vector<8x8xbf16>, vector<8x8xbf16>, vector<8x8xf32> -> vector<8x8xf32>
      %c0_13 = arith.constant 0 : index
      %c0_14 = arith.constant 0 : index
      %c0_15 = arith.constant 0 : index
      %c0_16 = arith.constant 0 : index
      %19 = vector.load %arg6[%c0_13, %c0_14, %c0_15, %c0_16] : memref<1x1x8x8xbf16, #tpu.memory_space<vmem>>, vector<1x1x8x8xbf16>
      %20 = vector.shape_cast %19 : vector<1x1x8x8xbf16> to vector<8x8xbf16>
      %c0_17 = arith.constant 0 : index
      %c0_18 = arith.constant 0 : index
      %21 = vector.load %arg10[%c0_17, %c0_18] : memref<8x1xf32, #tpu.memory_space<vmem>>, vector<8x1xf32>
      %cst_19 = arith.constant dense<0xFF800000> : vector<8xf32>
      %22 = vector.multi_reduction <maximumf>, %18, %cst_19 [1] : vector<8x8xf32> to vector<8xf32>
      %23 = vector.shape_cast %22 : vector<8xf32> to vector<8x1xf32>
      %24 = arith.maximumf %21, %23 : vector<8x1xf32>
      %25 = arith.subf %21, %24 : vector<8x1xf32>
      %26 = math.exp %25 : vector<8x1xf32>
      %27 = vector.broadcast %24 : vector<8x1xf32> to vector<8x8xf32>
      %28 = arith.subf %18, %27 : vector<8x8xf32>
      %29 = math.exp %28 : vector<8x8xf32>
      %c0_20 = arith.constant 0 : index
      %c0_21 = arith.constant 0 : index
      %30 = vector.load %arg11[%c0_20, %c0_21] : memref<8x1xf32, #tpu.memory_space<vmem>>, vector<8x1xf32>
      %31 = arith.mulf %26, %30 : vector<8x1xf32>
      %cst_22 = arith.constant dense<0.000000e+00> : vector<8xf32>
      %32 = vector.multi_reduction <add>, %29, %cst_22 [1] : vector<8x8xf32> to vector<8xf32>
      %33 = vector.shape_cast %32 : vector<8xf32> to vector<8x1xf32>
      %34 = arith.addf %31, %33 : vector<8x1xf32>
      %c0_23 = arith.constant 0 : index
      %c0_24 = arith.constant 0 : index
      %35 = vector.load %arg11[%c0_23, %c0_24] : memref<8x1xf32, #tpu.memory_space<vmem>>, vector<8x1xf32>
      tpu.vector_store %arg11[%c0_23, %c0_24], %34 {strides = array<i32>} : memref<8x1xf32, #tpu.memory_space<vmem>>, vector<8x1xf32>,
      %c0_25 = arith.constant 0 : index
      %c0_26 = arith.constant 0 : index
      %36 = vector.load %arg12[%c0_25, %c0_26] : memref<8x8xf32, #tpu.memory_space<vmem>>, vector<8x8xf32>
      %37 = vector.broadcast %26 : vector<8x1xf32> to vector<8x8xf32>
      %38 = arith.mulf %37, %36 : vector<8x8xf32>
      %39 = arith.truncf %29 : vector<8x8xf32> to vector<8x8xbf16>
      %cst_27 = arith.constant dense<0.000000e+00> : vector<8x8xf32>
      %40 = tpu.matmul %39, %20, %cst_27 {dimension_numbers = #tpu.dot_dimension_numbers<[1], [0], [0], [1], [0, 0, 1, 1], [], []>} : vector<8x8xbf16>, vector<8x8xbf16>, vector<8x8xf32> -> vector<8x8xf32>
      %41 = arith.addf %38, %40 : vector<8x8xf32>
      %c0_28 = arith.constant 0 : index
      %c0_29 = arith.constant 0 : index
      %42 = vector.load %arg12[%c0_28, %c0_29] : memref<8x8xf32, #tpu.memory_space<vmem>>, vector<8x8xf32>
      tpu.vector_store %arg12[%c0_28, %c0_29], %41 {strides = array<i32>} : memref<8x8xf32, #tpu.memory_space<vmem>>, vector<8x8xf32>,
      %c0_30 = arith.constant 0 : index
      %c0_31 = arith.constant 0 : index
      %43 = vector.load %arg10[%c0_30, %c0_31] : memref<8x1xf32, #tpu.memory_space<vmem>>, vector<8x1xf32>
      tpu.vector_store %arg10[%c0_30, %c0_31], %24 {strides = array<i32>} : memref<8x1xf32, #tpu.memory_space<vmem>>, vector<8x1xf32>,
    } else {
    }
    %11 = arith.cmpi eq, %arg3, %arg1 : i32
    %12 = arith.extui %11 : i1 to i32
    %c0_i32_5 = arith.constant 0 : i32
    %13 = arith.cmpi ne, %12, %c0_i32_5 : i32
    scf.if %13 {
      %c0 = arith.constant 0 : index
      %c0_6 = arith.constant 0 : index
      %c0_7 = arith.constant 0 : index
      %c0_8 = arith.constant 0 : index
      %14 = vector.load %arg4[%c0, %c0_6, %c0_7, %c0_8] : memref<1x1x8x8xbf16, #tpu.memory_space<vmem>>, vector<1x1x8x8xbf16>
      %15 = vector.shape_cast %14 : vector<1x1x8x8xbf16> to vector<8x8xbf16>
      %c0_9 = arith.constant 0 : index
      %c0_10 = arith.constant 0 : index
      %c0_11 = arith.constant 0 : index
      %c0_12 = arith.constant 0 : index
      %16 = vector.load %arg5[%c0_9, %c0_10, %c0_11, %c0_12] : memref<1x1x8x8xbf16, #tpu.memory_space<vmem>>, vector<1x1x8x8xbf16>
      %17 = vector.shape_cast %16 : vector<1x1x8x8xbf16> to vector<8x8xbf16>
      %cst = arith.constant dense<0.000000e+00> : vector<8x8xf32>
      %18 = tpu.matmul %15, %17, %cst {dimension_numbers = #tpu.dot_dimension_numbers<[1], [1], [0], [0], [0, 0, 1, 0], [], []>} : vector<8x8xbf16>, vector<8x8xbf16>, vector<8x8xf32> -> vector<8x8xf32>
      %19 = tpu.iota {dimensions = array<i32: 0>} : vector<8x8xi32>
      %20 = tpu.iota {dimensions = array<i32: 1>} : vector<8x8xi32>
      %21 = arith.cmpi sge, %19, %20 : vector<8x8xi32>
      %cst_13 = arith.constant -1.000000e+30 : f32
      %22 = vector.broadcast %cst_13 : f32 to vector<8x8xf32>
      %23 = arith.select %21, %18, %22 : vector<8x8xi1>, vector<8x8xf32>
      %c0_14 = arith.constant 0 : index
      %c0_15 = arith.constant 0 : index
      %c0_16 = arith.constant 0 : index
      %c0_17 = arith.constant 0 : index
      %24 = vector.load %arg6[%c0_14, %c0_15, %c0_16, %c0_17] : memref<1x1x8x8xbf16, #tpu.memory_space<vmem>>, vector<1x1x8x8xbf16>
      %25 = vector.shape_cast %24 : vector<1x1x8x8xbf16> to vector<8x8xbf16>
      %c0_18 = arith.constant 0 : index
      %c0_19 = arith.constant 0 : index
      %26 = vector.load %arg10[%c0_18, %c0_19] : memref<8x1xf32, #tpu.memory_space<vmem>>, vector<8x1xf32>
      %cst_20 = arith.constant dense<0xFF800000> : vector<8xf32>
      %27 = vector.multi_reduction <maximumf>, %23, %cst_20 [1] : vector<8x8xf32> to vector<8xf32>
      %28 = vector.shape_cast %27 : vector<8xf32> to vector<8x1xf32>
      %29 = arith.maximumf %26, %28 : vector<8x1xf32>
      %30 = arith.subf %26, %29 : vector<8x1xf32>
      %31 = math.exp %30 : vector<8x1xf32>
      %32 = vector.broadcast %29 : vector<8x1xf32> to vector<8x8xf32>
      %33 = arith.subf %23, %32 : vector<8x8xf32>
      %34 = math.exp %33 : vector<8x8xf32>
      %c0_21 = arith.constant 0 : index
      %c0_22 = arith.constant 0 : index
      %35 = vector.load %arg11[%c0_21, %c0_22] : memref<8x1xf32, #tpu.memory_space<vmem>>, vector<8x1xf32>
      %36 = arith.mulf %31, %35 : vector<8x1xf32>
      %cst_23 = arith.constant dense<0.000000e+00> : vector<8xf32>
      %37 = vector.multi_reduction <add>, %34, %cst_23 [1] : vector<8x8xf32> to vector<8xf32>
      %38 = vector.shape_cast %37 : vector<8xf32> to vector<8x1xf32>
      %39 = arith.addf %36, %38 : vector<8x1xf32>
      %c0_24 = arith.constant 0 : index
      %c0_25 = arith.constant 0 : index
      %40 = vector.load %arg11[%c0_24, %c0_25] : memref<8x1xf32, #tpu.memory_space<vmem>>, vector<8x1xf32>
      tpu.vector_store %arg11[%c0_24, %c0_25], %39 {strides = array<i32>} : memref<8x1xf32, #tpu.memory_space<vmem>>, vector<8x1xf32>,
      %c0_26 = arith.constant 0 : index
      %c0_27 = arith.constant 0 : index
      %41 = vector.load %arg12[%c0_26, %c0_27] : memref<8x8xf32, #tpu.memory_space<vmem>>, vector<8x8xf32>
      %42 = vector.broadcast %31 : vector<8x1xf32> to vector<8x8xf32>
      %43 = arith.mulf %42, %41 : vector<8x8xf32>
      %44 = arith.truncf %34 : vector<8x8xf32> to vector<8x8xbf16>
      %cst_28 = arith.constant dense<0.000000e+00> : vector<8x8xf32>
      %45 = tpu.matmul %44, %25, %cst_28 {dimension_numbers = #tpu.dot_dimension_numbers<[1], [0], [0], [1], [0, 0, 1, 1], [], []>} : vector<8x8xbf16>, vector<8x8xbf16>, vector<8x8xf32> -> vector<8x8xf32>
      %46 = arith.addf %43, %45 : vector<8x8xf32>
      %c0_29 = arith.constant 0 : index
      %c0_30 = arith.constant 0 : index
      %47 = vector.load %arg12[%c0_29, %c0_30] : memref<8x8xf32, #tpu.memory_space<vmem>>, vector<8x8xf32>
      tpu.vector_store %arg12[%c0_29, %c0_30], %46 {strides = array<i32>} : memref<8x8xf32, #tpu.memory_space<vmem>>, vector<8x8xf32>,
      %c0_31 = arith.constant 0 : index
      %c0_32 = arith.constant 0 : index
      %48 = vector.load %arg10[%c0_31, %c0_32] : memref<8x1xf32, #tpu.memory_space<vmem>>, vector<8x1xf32>
      tpu.vector_store %arg10[%c0_31, %c0_32], %29 {strides = array<i32>} : memref<8x1xf32, #tpu.memory_space<vmem>>, vector<8x1xf32>,
      %c0_33 = arith.constant 0 : index
      %c0_34 = arith.constant 0 : index
      %49 = vector.load %arg12[%c0_33, %c0_34] : memref<8x8xf32, #tpu.memory_space<vmem>>, vector<8x8xf32>
      %c0_35 = arith.constant 0 : index
      %c0_36 = arith.constant 0 : index
      %50 = vector.load %arg11[%c0_35, %c0_36] : memref<8x1xf32, #tpu.memory_space<vmem>>, vector<8x1xf32>
      %51 = tpu.reciprocal %50 {approx = true} : vector<8x1xf32> -> vector<8x1xf32>
      %52 = vector.broadcast %51 : vector<8x1xf32> to vector<8x8xf32>
      %53 = arith.mulf %49, %52 : vector<8x8xf32>
      %54 = arith.truncf %53 : vector<8x8xf32> to vector<8x8xbf16>
      %c0_37 = arith.constant 0 : index
      %c0_38 = arith.constant 0 : index
      %55 = vector.load %arg13[%c0_37, %c0_38] : memref<8x32xf32, #tpu.memory_space<vmem>>, vector<8x32xf32>
      %c0_39 = arith.constant 0 : index
      %c0_40 = arith.constant 0 : index
      %c0_41 = arith.constant 0 : index
      %56 = vector.load %arg7[%c0_39, %c0_40, %c0_41] : memref<1x8x32xbf16, #tpu.memory_space<vmem>>, vector<1x8x32xbf16>
      %57 = vector.shape_cast %56 : vector<1x8x32xbf16> to vector<8x32xbf16>
      %cst_42 = arith.constant dense<0.000000e+00> : vector<8x32xf32>
      %58 = tpu.matmul %54, %57, %cst_42 {dimension_numbers = #tpu.dot_dimension_numbers<[1], [0], [0], [1], [0, 0, 1, 1], [], []>} : vector<8x8xbf16>, vector<8x32xbf16>, vector<8x32xf32> -> vector<8x32xf32>
      %59 = arith.addf %55, %58 : vector<8x32xf32>
      %c0_43 = arith.constant 0 : index
      %c0_44 = arith.constant 0 : index
      %60 = vector.load %arg13[%c0_43, %c0_44] : memref<8x32xf32, #tpu.memory_space<vmem>>, vector<8x32xf32>
      tpu.vector_store %arg13[%c0_43, %c0_44], %59 {strides = array<i32>} : memref<8x32xf32, #tpu.memory_space<vmem>>, vector<8x32xf32>,
      %c3_i32 = arith.constant 3 : i32
      %61 = arith.cmpi eq, %arg2, %c3_i32 : i32
      %62 = arith.extui %61 : i1 to i32
      %c0_i32_45 = arith.constant 0 : i32
      %63 = arith.cmpi ne, %62, %c0_i32_45 : i32
      scf.if %63 {
        %c0_46 = arith.constant 0 : index
        %c0_47 = arith.constant 0 : index
        %64 = vector.load %arg13[%c0_46, %c0_47] : memref<8x32xf32, #tpu.memory_space<vmem>>, vector<8x32xf32>
        %c0_48 = arith.constant 0 : index
        %c0_49 = arith.constant 0 : index
        %65 = vector.load %arg8[%c0_48, %c0_49] : memref<1x32xf32, #tpu.memory_space<vmem>>, vector<1x32xf32>
        %66 = vector.broadcast %65 : vector<1x32xf32> to vector<8x32xf32>
        %67 = arith.addf %64, %66 : vector<8x32xf32>
        %c0_50 = arith.constant 0 : index
        %c0_51 = arith.constant 0 : index
        %c0_52 = arith.constant 0 : index
        %68 = vector.load %arg9[%c0_50, %c0_51, %c0_52] : memref<1x8x32xf32, #tpu.memory_space<vmem>>, vector<1x8x32xf32>
        %69 = vector.shape_cast %68 : vector<1x8x32xf32> to vector<8x32xf32>
        %70 = vector.shape_cast %67 : vector<8x32xf32> to vector<1x8x32xf32>
        tpu.vector_store %arg9[%c0_50, %c0_51, %c0_52], %70 {strides = array<i32>} : memref<1x8x32xf32, #tpu.memory_space<vmem>>, vector<1x8x32xf32>,
      } else {
      }
    } else {
    }
    return
  }
  func.func @transform_0(%arg0: i32, %arg1: i32, %arg2: i32, %arg3: i32) -> (i32, i32, i32, i32) {
    %c0_i32 = arith.constant 0 : i32
    %c0_i32_0 = arith.constant 0 : i32
    return %arg0, %arg2, %arg1, %c0_i32 : i32, i32, i32, i32
  }
  func.func @transform_1(%arg0: i32, %arg1: i32, %arg2: i32, %arg3: i32) -> (i32, i32, i32, i32) {
    %0 = arith.minsi %arg3, %arg1 : i32
    %c0_i32 = arith.constant 0 : i32
    %c0_i32_0 = arith.constant 0 : i32
    return %arg0, %arg2, %0, %c0_i32 : i32, i32, i32, i32
  }
  func.func @transform_2(%arg0: i32, %arg1: i32, %arg2: i32, %arg3: i32) -> (i32, i32, i32, i32) {
    %0 = arith.minsi %arg3, %arg1 : i32
    %c0_i32 = arith.constant 0 : i32
    %c0_i32_0 = arith.constant 0 : i32
    return %arg0, %arg2, %0, %c0_i32 : i32, i32, i32, i32
  }
  func.func @transform_3(%arg0: i32, %arg1: i32, %arg2: i32, %arg3: i32) -> (i32, i32, i32) {
    %c0_i32 = arith.constant 0 : i32
    %c0_i32_0 = arith.constant 0 : i32
    %c0_i32_1 = arith.constant 0 : i32
    return %arg2, %c0_i32, %c0_i32_0 : i32, i32, i32
  }
  func.func @transform_4(%arg0: i32, %arg1: i32, %arg2: i32, %arg3: i32) -> (i32, i32) {
    %c0_i32 = arith.constant 0 : i32
    %c0_i32_0 = arith.constant 0 : i32
    %c0_i32_1 = arith.constant 0 : i32
    return %c0_i32, %c0_i32_0 : i32, i32
  }
  func.func @transform_5(%arg0: i32, %arg1: i32, %arg2: i32, %arg3: i32) -> (i32, i32, i32) {
    %c0_i32 = arith.constant 0 : i32
    %c0_i32_0 = arith.constant 0 : i32
    return %arg0, %arg1, %c0_i32 : i32, i32, i32
  }
}

</mosaic_0001>

<bundles_post_ra>
// kernel: causal_self_attention_pallas.2
= control target key start
LH: loop header
LB: loop body
LE: loop exit
PB: predicated region body
PF: predicated region fallthrough
CT: control target
= control target key end

     0   :  { %s745_s18 = smov 0   ;;  %s747_s19 = smov 0   ;;  %s816_s0 = inlined_call_operand.vmem [shape: bf16[2,8,32], index: 0, kind: input, shape index: {}]   ;;  %s817_s1 = inlined_call_operand.vmem [shape: bf16[32,96], index: 1, kind: input, shape index: {}]   ;;  %s818_s2 = inlined_call_operand.vmem [shape: f32[1,96], index: 2, kind: input, shape index: {}]   ;;  %s819_s3 = inlined_call_operand.vmem [shape: bf16[2,4,8,8], index: 3, kind: output, shape index: {0}]   ;;  %s820_s4 = inlined_call_operand.vmem [shape: bf16[2,4,8,8], index: 4, kind: output, shape index: {1}]   ;;  %s821_s5 = inlined_call_operand.vmem [shape: bf16[2,4,8,8], index: 5, kind: output, shape index: {2}]  }
   0x1   :  { %s749_s20 = smov 0  }
   0x2 LB: > { %s28_s21 = sadd.s32 1, %s696_s19  ;;  %p600_p0 = scmp.ge.s32.totalorder %s700_s20, 1  ;;  %s700_s20 = sphi %s749_s20, %s16_s20   ;;  %s696_s19 = sphi %s747_s19, %s823_s19   ;;  %s692_s18 = sphi %s745_s18, %s822_s18  }
   0x3   : > { %p30_p1 = scmp.ge.s32.totalorder %s28_s21, 2  ;;  %p214_p2 = scmp.lt.s32.totalorder %s700_s20, 3 }
   0x5   : > { %s825_s21 = smov (%p30_p1, %s28_s21), 0  ;;  %p215_p3 = pnand %p600_p0, %p214_p2 }
   0x6   : > { %p263_p4 = scmp.lt.s32.totalorder (!%p215_p3), %s692_s18, 1  ;;  %s704_s11 = smov (!%p215_p3), 120  }
   0x7   : > { %218 = sbr.rel (%p215_p3) target bundleno = 354 (0x162), region = 32  ;;  %s705_s12 = smov (!%p215_p3), 96  }
   0x8   : > { %s706_s13 = smov (!%p215_p3), 88   ;;  %s707_s14 = smov (!%p215_p3), 64  }
   0x9   : > { %s708_s15 = smov (!%p215_p3), 112   ;;  %s709_s16 = smov (!%p215_p3), 56  }
   0xa   : > { %s710_s17 = smov (!%p215_p3), 48   ;;  %s712_s22 = smov (!%p215_p3), 72  }
   0xb   : > { %s713_s23 = smov (!%p215_p3), 104   ;;  %s714_s24 = smov (!%p215_p3), 40  }
   0xc   : > { %v676_v0 = vld [vmem:[%s817_s1 + $0x8] sm:$0xff]   ;;  %v702_v1 = vmov 0.0   ;;  %v677_v2 = vld [vmem:[%s817_s1] sm:$0xff]   ;;  %vm703_vm0 = vmmov 0   ;;  %s827_s18 = smov (!%p263_p4, %s692_s18), 1  ;;  %vm319_vm1 = vcmask 261120  }
   0xd   : > { %631 = vmatprep.subr.bf16.mxu0 %v702_v1  ;;  %635 = vmatprep.mubr.msk.bf16.mxu0 %vm703_vm0, %v702_v1  ;;  %s601_s26 = sshll.u32 %s827_s18, 2  ;;  %v608_v4 = vld [vmem:[%s818_s2] ss:$0 sm:$0xff]  ;;  %s775_s7 = sshll.u32 %s827_s18, 4  ;;  %vm364_vm2 = vcmask 60416  }
   0xe   : > { %632 = vmatpush3.bf16.msra.mxu0 %v676_v0  ;;  %s269_s29 = scalar_lea.vmem %s816_s0, %s601_s26  ;;  %s781_s10 = scalar_lea.vmem %s819_s3, %s775_s7 }
   0xf   : > { %633 = vmatprep.subr.bf16.mxu0 %v702_v1  ;;  %v295_v3 = vld [vmem:[%s269_s29] sm:$0xf]  ;;  %s711_s18 = smov 80   ;;  %s285_s27 = scalar_lea.vmem %s820_s4, %s775_s7 }
  0x10   : > { %s293_s30 = scalar_lea.vmem %s821_s5, %s775_s7 }
  0x12   : > { %634 = vmatpush3.bf16.msra.mxu0 %v677_v2 }
  0x15   : > { %636 = vmatmul.mubr.msk.bf16.vlgmr.msra.gmra.mxu0 %vm319_vm1, %v295_v3 }
  0xd5   : > { %v357_v5 = vpop.f32.mrf.mxu0 }
  0xd6   : > { %v358_v6 = vadd.f32 %v608_v4, %v357_v5 }
  0xd7   : > { %v637_v7 = vpop.f32.mrf.mxu0 }
  0xd8   : > { %v363_v8 = vpack.c.bf16 %v358_v6, %v358_v6 }
  0xd9   : > { %v360_v9 = vpop.f32.mrf.mxu0 }
  0xda   : > { %377 = vrot.lane.b32.xlu1 %v363_v8, %s704_s11  ;;  %369 = vrot.lane.b32.xlu0 %v363_v8, %s705_s12  ;;  %365 = vst.msk [vmem:[%s781_s10] sm:$0xf] %vm364_vm2, %v363_v8 }
  0xdb   : > { %v638_v10 = vpop.f32.mrf.mxu0 }
  0xde   : > { %382 = vrot.lane.b32.xlu1 %v363_v8, %s706_s13  ;;  %373 = vrot.lane.b32.xlu0 %v363_v8, %s707_s14 }
  0xe2   : > { %392 = vrot.lane.b32.xlu1 %v363_v8, %s708_s15  ;;  %387 = vrot.lane.b32.xlu0 %v363_v8, %s709_s16 }
  0xe6   : > { %402 = vrot.lane.b32.xlu1 %v363_v8, %s710_s17  ;;  %397 = vrot.lane.b32.xlu0 %v363_v8, %s711_s18 }
  0xea   : > { %412 = vrot.lane.b32.xlu1 %v363_v8, %s712_s22  ;;  %407 = vrot.lane.b32.xlu0 %v363_v8, %s713_s23 }
  0xee   : > { %417 = vrot.lane.b32.xlu0 %v363_v8, %s714_s24 }
 0x14c   : > { %v378_v11 = vpop.permute.xlu1 %377  ;;  %v370_v12 = vpop.permute.xlu0 %369 }
 0x14d   : > { %613 = vst.msk [vmem:[%s781_s10 + $0x4] sm:$0xf] %vm364_vm2, %v378_v11  ;;  %372 = vst.msk [vmem:[%s285_s27] sm:$0xf] %vm364_vm2, %v370_v12 }
 0x150   : > { %v383_v13 = vpop.permute.xlu1 %382  ;;  %v374_v14 = vpop.permute.xlu0 %373 }
 0x151   : > { %614 = vst.msk [vmem:[%s285_s27 + $0x4] sm:$0xf] %vm364_vm2, %v383_v13  ;;  %376 = vst.msk [vmem:[%s293_s30] sm:$0xf] %vm364_vm2, %v374_v14 }
 0x154   : > { %v393_v15 = vpop.permute.xlu1 %392  ;;  %v388_v16 = vpop.permute.xlu0 %387 }
 0x155   : > { %616 = vst.msk [vmem:[%s781_s10 + $0x8] sm:$0xf] %vm364_vm2, %v393_v15  ;;  %615 = vst.msk [vmem:[%s293_s30 + $0x4] sm:$0xf] %vm364_vm2, %v388_v16 }
 0x158   : > { %v403_v17 = vpop.permute.xlu1 %402  ;;  %v398_v18 = vpop.permute.xlu0 %397 }
 0x159   : > { %618 = vst.msk [vmem:[%s293_s30 + $0x8] sm:$0xf] %vm364_vm2, %v403_v17  ;;  %617 = vst.msk [vmem:[%s285_s27 + $0x8] sm:$0xf] %vm364_vm2, %v398_v18 }
 0x15c   : > { %v413_v19 = vpop.permute.xlu1 %412  ;;  %v408_v20 = vpop.permute.xlu0 %407 }
 0x15d   : > { %620 = vst.msk [vmem:[%s285_s27 + $0xc] sm:$0xf] %vm364_vm2, %v413_v19  ;;  %619 = vst.msk [vmem:[%s781_s10 + $0xc] sm:$0xf] %vm364_vm2, %v408_v20 }
 0x160   : > { %v418_v21 = vpop.permute.xlu0 %417 }
 0x161   : > { %621 = vst.msk [vmem:[%s293_s30 + $0xc] sm:$0xf] %vm364_vm2, %v418_v21 }
 0x162 PF: > { %s16_s20 = sadd.s32 1, %s700_s20   ;;  %s822_s18 = smov %s696_s19 }
 0x163   : > { %p13_p5 = scmp.ge.s32.totalorder %s16_s20, 4   ;;  %s823_s19 = smov %s825_s21 }
 0x165   :  { %15 = sbr.rel (!%p13_p5) target bundleno = 2 (0x2), region = 95 }

// kernel: causal_self_attention_pallas.3
= control target key start
LH: loop header
LB: loop body
LE: loop exit
PB: predicated region body
PF: predicated region fallthrough
CT: control target
= control target key end

     0   :  { %10 = vsyncpa [#allocation7], 0  ;;  %s1365_s0 = inlined_call_operand.vmem [shape: bf16[2,4,8,8], index: 0, kind: input, shape index: {}]   ;;  %s1366_s1 = inlined_call_operand.vmem [shape: bf16[2,4,8,8], index: 1, kind: input, shape index: {}]   ;;  %s1367_s2 = inlined_call_operand.vmem [shape: bf16[2,4,8,8], index: 2, kind: input, shape index: {}]   ;;  %s1368_s3 = inlined_call_operand.vmem [shape: bf16[4,8,32], index: 3, kind: input, shape index: {}]   ;;  %s1369_s4 = inlined_call_operand.vmem [shape: f32[1,32], index: 4, kind: input, shape index: {}]   ;;  %s1370_s5 = inlined_call_operand.hbm [shape: f32[2,8,32], index: 5, kind: output, shape index: {}]  }
   0x1   :  { %12 = vsyncpa [#allocation7 + $0x1], 0  ;;  %s1191_s18 = smov 0   ;;  %s1193_s19 = smov 0  }
   0x2   :  { %s1195_s20 = smov 0   ;;  %s1197_s21 = smov 0  }
   0x3   :  { %s1199_s22 = smov 0   ;;  %s1201_s23 = smov 0  }
   0x4   :  { %s1203_s24 = smov 0   ;;  %s1205_s25 = smov 0  }
   0x5 LB: > { %1375 = sst [smem:[#allocation9_spill]] %s1145_s23  ;;  %s927_s26 = sadd.s32 4294967295, %s1153_s25   ;;  %s1153_s25 = sphi %s1205_s25, %s18_s25   ;;  %s1149_s24 = sphi %s1203_s24, %s1385_s24   ;;  %s1145_s23 = sphi %s1201_s23, %s1384_s23   ;;  %s1141_s22 = sphi %s1199_s22, %s1383_s22   ;;  %s1137_s21 = sphi %s1197_s21, %s1382_s21   ;;  %s1133_s20 = sphi %s1195_s20, %s1388_s20   ;;  %s1129_s19 = sphi %s1193_s19, %s1387_s19   ;;  %s1125_s18 = sphi %s1191_s18, %s1386_s18  }
   0x6   : > { %1376 = sst [smem:[#allocation10_spill]] %s1149_s24  ;;  %s928_s27 = sadd.s32 4294967294, %s1153_s25  }
   0x7   : > { %s36_s28 = sadd.s32 1, %s1145_s23  ;;  %s44_s29 = sadd.s32 1, %s1149_s24 }
   0x8   : > { %p38_p0 = scmp.ge.s32.totalorder %s36_s28, 4  ;;  %p208_p1 = scmp.ne.s32.totalorder %s1133_s20, %s1129_s19 }
   0x9   : > { %p209_p2 = scmp.eq.s32.totalorder %s927_s26, 7  ;;  %p214_p4 = scmp.ne.s32.totalorder %s1129_s19, %s1125_s18 }
   0xa   : > { %s1390_s28 = smov (%p38_p0, %s36_s28), 0  ;;  %s1392_s29 = smov (!%p38_p0, %s44_s29), %s1149_s24 }
   0xb   : > { %1377 = sst [smem:[#allocation11_spill]] %s1390_s28  ;;  %p1240_p3 = por %p209_p2, %p208_p1 }
   0xc   : > { %p46_p5 = scmp.ge.s32.totalorder %s1392_s29, 2  ;;  %p215_p6 = scmp.eq.s32.totalorder %s928_s27, 7 }
   0xd   : > { %p931_p7 = scmp.ge.s32.totalorder %s1153_s25, 1  ;;  %p293_p8 = scmp.lt.s32.totalorder %s1153_s25, 9 }
   0xe   : > { %s1394_s29 = smov (%p46_p5, %s1392_s29), 0  ;;  %p1250_p9 = por %p215_p6, %p214_p4 }
   0xf   : > { %1379 = sst [smem:[#allocation12_spill]] %s1394_s29  ;;  %p294_p10 = pnand %p931_p7, %p293_p8 }
  0x10   : > { %s193_s7 = ssub.s32 %s1149_s24, %s1394_s29  ;;  %s198_s8 = sadd.s32 1, %s1133_s20 }
  0x11   : > { %p196_p11 = scmp.eq.s32.totalorder %s193_s7, 0  ;;  %297 = sbr.rel (%p294_p10) target bundleno = 1036 (0x40c), region = 40 }
  0x12   : > { %s1371_s10 = sand.u32 (!%p294_p10), 1, %s1129_s19   ;;  %p357_p12 = scmp.lt.s32.totalorder (!%p294_p10), %s1141_s22, 1 }
  0x13   : > { %s1258_s9 = scalar_select %p196_p11, %s1133_s20, %s198_s8  }
  0x14   : > { %s1264_s11 = sshll.u32 (!%p294_p10), %s1371_s10, 3  ;;  %p359_p13 = scmp.lt.s32.totalorder (!%p294_p10), %s1137_s21, 3 }
  0x15   : > { %p403_p0 = scmp.eq.s32.totalorder (!%p294_p10), %s1137_s21, 0  ;;  %s356_s23 = scalar_lea.vmem (!%p294_p10), [#allocation6], %s1264_s11 }
  0x16   : > { %s358_s12 = scalar_select %p357_p12, %s1141_s22, 1  ;;  %vm409_vm0 = vcmask (%p403_p0), 261120   ;;  %v1155_v0 = vmov (%p403_p0), 0.0  }
  0x17   : > { %s360_s13 = scalar_select %p359_p13, %s1137_s21, 3  ;;  %410 = vst.msk [vmem:[#allocation5] sm:$0xff] (%p403_p0), %vm409_vm0, %v1155_v0 }
  0x18   : > { %s933_s14 = sshll.u32 %s358_s12, 2  ;;  %408 = sbr.rel (!%p403_p0) target bundleno = 29 (0x1d), region = 44 }
  0x19   : > { %s365_s15 = sadd.s32 %s933_s14, %s360_s13  ;;  %s939_s16 = sshll.u32 %s360_s13, 2 }
  0x1a   : > { %s1270_s17 = sshll.u32 %s365_s15, 2  ;;  %s1275_s7 = scalar_lea.vmem %s1368_s3, %s939_s16 }
  0x1b   : > { %s367_s29 = scalar_lea.vmem %s1365_s0, %s1270_s17  ;;  %s380_s12 = scalar_lea.vmem %s1366_s1, %s1270_s17 }
  0x1c   : > { %s395_s15 = scalar_lea.vmem %s1367_s2, %s1270_s17 }
  0x1d PF: > { %vm417_vm1 = vcmask 64512   ;;  %v560_v1 = vld [vmem:[%s380_s12] sm:$0xf]  ;;  %v1156_v2 = vmov 0.0   ;;  %vm1157_vm2 = vmmov 0   ;;  %v608_v5 = vlaneseq  ;;  %p946_p1 = scmp.ne.s32.totalorder %s1137_s21, 3 }
  0x1e   : > { %959 = vmatprep.subr.bf16.mxu0 %v1156_v2  ;;  %418 = vst.msk [vmem:[#allocation4] sm:$0xff] %vm417_vm1, %v1156_v2  ;;  %v566_v3 = vsel %vm417_vm1, %v560_v1, 0  ;;  %961 = vmatprep.mubr.msk.bf16.mxu0 %vm1157_vm2, %v1156_v2  ;;  %v559_v4 = vld [vmem:[%s367_s29] sm:$0xf]  ;;  %vm414_vm4 = vcmask 7168   ;;  %v1158_v13 = vmov -inf  }
  0x1f   : > { %960 = vmatpush3.bf16.xpose.msra.mxu0 %v566_v3  ;;  %965 = vmatprep.subr.bf16.mxu1 %v1156_v2  ;;  %v609_v6 = vshrl.u32 %v608_v5, 7  ;;  %v611_v7 = vand.u32 127, %v608_v5  ;;  %415 = vst.msk [vmem:[#allocation2] sm:$0xff] %vm414_vm4, %v1158_v13  ;;  %416 = vst.msk [vmem:[#allocation3] sm:$0xff] %vm414_vm4, %v1156_v2  ;;  %v1159_v15 = vmov 0   ;;  %vm650_vm5 = vcmask 1043456  }
  0x20   : > { %967 = vmatprep.mubr.msk.bf16.mxu1 %vm1157_vm2, %v1156_v2  ;;  %1053 = vset.pattern.permute.xlu0 %v1159_v15  ;;  %v614_v20 = vld [vmem:[%s395_s15] sm:$0xf]  ;;  %v707_v50 = vld [vmem:[#allocation5] sm:$0xff]  ;;  %vm756_vm6 = vcmask 261120  }
  0x21   : > { %vm612_vm3 = vcmp.ge.s32.totalorder %v609_v6, %v611_v7  ;;  %1054 = vset.pattern.permute.xlu1 %v1159_v15  ;;  %v652_v21 = vsel %vm650_vm5, %v614_v20, 0  ;;  %v708_v25 = vld [vmem:[%s1275_s7] sm:$0xf] }
  0x22   : > { %966 = vmatpush3.bf16.msra.mxu1 %v652_v21  ;;  %v713_v28 = vsel %vm650_vm5, %v708_v25, 0 }
  0x23   : > { %971 = vmatprep.subr.bf16.mxu1 %v1156_v2 }
  0x25   : > { %v639_v38 = vld [vmem:[#allocation4] sm:$0xff] }
  0x26   : > { %962 = vmatmul.mubr.msk.bf16.vlgmr.msra.gmra.mxu0 %vm417_vm1, %v559_v4  ;;  %v615_v16 = vld [vmem:[#allocation2] sm:$0xff]  ;;  %v631_v32 = vld [vmem:[#allocation3] sm:$0xff] }
  0xe6   : > { %v602_v8 = vpop.f32.mrf.mxu0 }
  0xe7   : > { %v613_v9 = vsel %vm612_vm3, %v602_v8, -1e+30 }
  0xe8   : > { %v963_v10 = vpop.f32.mrf.mxu0  ;;  %v616_v11 = vsel %vm417_vm1, %v613_v9, -inf }
  0xe9   : > { %617 = vmax.xlane.f32.xlu0 %v616_v11 }
  0xea   : > { %v605_v12 = vpop.f32.mrf.mxu0 }
  0xec   : > { %v964_v14 = vpop.f32.mrf.mxu0 }
 0x172   : > { %v618_v17 = vpop.xlane.xlu0 %617 }
 0x173   : > { %v619_v18 = vmax.f32 %v615_v16, %v618_v17 }
 0x175   : > { %v620_v19 = vsub.f32 %v615_v16, %v619_v18  ;;  %696 = vst.msk [vmem:[#allocation2] sm:$0xff] %vm414_vm4, %v619_v18  ;;  %625 = vperm.xlu0 %1053, %v619_v18  }
 0x177   : > { %v621_v27 = vmul.f32 1.442695, %v620_v19 }
 0x1f0   : > { %v626_v22 = vpop.permute.xlu0 %625 }
 0x1f1   : > { %v628_v23 = vsub.f32 %v613_v9, %v626_v22 }
 0x1f3   : > { %v629_v24 = vmul.f32 1.442695, %v628_v23 }
 0x1f5   : > { %1055 = vpow2.f32 %v629_v24 }
 0x1f6   : > { %1057 = vpow2.f32 %v621_v27 }
 0x202   : > { %v1056_v26 = vpop.eup %1055 }
 0x203   : > { %v633_v29 = vsel %vm417_vm1, %v1056_v26, 0.0  ;;  %v646_v30 = vpack.c.bf16 %v1056_v26, %v1056_v26  ;;  %v1058_v31 = vpop.eup %1057 }
 0x204   : > { %634 = vadd.xlane.f32.xlu1 %v633_v29  ;;  %v632_v33 = vmul.f32 %v1058_v31, %v631_v32 }
 0x205   : > { %968 = vmatmul.mubr.msk.bf16.vlgmr.msra.gmra.mxu1 %vm417_vm1, %v646_v30 }
 0x206   : > { %972 = vmatpush3.bf16.msra.mxu1 %v713_v28  ;;  %973 = vmatprep.mubr.msk.bf16.mxu1 %vm1157_vm2, %v1156_v2 }
 0x215   : > { %642 = vperm.xlu1 %1054, %v1058_v31  }
 0x28d   : > { %v635_v34 = vpop.xlane.xlu1 %634 }
 0x28e   : > { %v636_v35 = vadd.f32 %v635_v34, %v632_v33 }
 0x290   : > { %638 = vst.msk [vmem:[#allocation3] sm:$0xff] %vm414_vm4, %v636_v35 }
 0x291   : > { %v643_v39 = vpop.permute.xlu1 %642 }
 0x292   : > { %v645_v40 = vmul.f32 %v643_v39, %v639_v38 }
 0x297   : > { %v698_v36 = vld [vmem:[#allocation3] sm:$0xff] }
 0x298   : > { %1059 = vrcp.f32 %v698_v36 }
 0x2a5   : > { %v1060_v37 = vpop.eup %1059 }
 0x2a6   : > { %702 = vperm.xlu1 %1054, %v1060_v37  }
 0x2c5   : > { %v688_v41 = vpop.f32.mrf.mxu1 }
 0x2c6   : > { %v694_v42 = vadd.f32 %v688_v41, %v645_v40 }
 0x2c7   : > { %v969_v43 = vpop.f32.mrf.mxu1 }
 0x2c8   : > { %695 = vst.msk [vmem:[#allocation4] sm:$0xff] %vm417_vm1, %v694_v42 }
 0x2c9   : > { %v691_v44 = vpop.f32.mrf.mxu1 }
 0x2cb   : > { %v970_v45 = vpop.f32.mrf.mxu1 }
 0x2cf   : > { %v697_v46 = vld [vmem:[#allocation4] sm:$0xff] }
 0x321   : > { %v703_v47 = vpop.permute.xlu1 %702 }
 0x322   : > { %v705_v48 = vmul.f32 %v703_v47, %v697_v46 }
 0x324   : > { %v706_v49 = vpack.c.bf16 %v705_v48, %v705_v48 }
 0x326   : > { %974 = vmatmul.mubr.msk.bf16.vlgmr.msra.gmra.mxu1 %vm417_vm1, %v706_v49 }
 0x3e6   : > { %v749_v51 = vpop.f32.mrf.mxu1 }
 0x3e7   : > { %v755_v52 = vadd.f32 %v749_v51, %v707_v50 }
 0x3e8   : > { %v975_v53 = vpop.f32.mrf.mxu1  ;;  %761 = sbr.rel (%p946_p1) target bundleno = 1012 (0x3f4), region = 60 }
 0x3e9   : > { %757 = vst.msk [vmem:[#allocation5] sm:$0xff] %vm756_vm6, %v755_v52 }
 0x3ea   : > { %v752_v54 = vpop.f32.mrf.mxu1 }
 0x3ec   : > { %v976_v55 = vpop.f32.mrf.mxu1 }
 0x3ed   : > { %v947_v57 = vld [vmem:[%s1369_s4] ss:$0 sm:$0xff] }
 0x3f0   : > { %v762_v56 = vld [vmem:[#allocation5] sm:$0xff] }
 0x3f1   : > { %v770_v58 = vadd.f32 %v947_v57, %v762_v56 }
 0x3f3   : > { %771 = vst.msk [vmem:[%s356_s23] sm:$0xff] %vm756_vm6, %v770_v58 }
 0x3f4 PF: > { %s949_s16 = sshll.u32 %s1141_s22, 7  ;;  %s787_s27 = sshll.u32 %s356_s23, 4  ;;  %s788_s27 = int_to_ptr.vmem [resolvable:$true] %s787_s27 }
 0x3f5   : > { %s785_s21 = scalar_lea.hbm %s1370_s5, %s949_s16  ;;  %s1381_s7 = sand.u32 1, %s1129_s19  }
 0x3f6   : > { %s773_s8 = scalar_lea.sflag [#allocation7], %s1381_s7  ;;  %s1061_s12 = scalar_lea.vmem %s788_s27, 128 }
 0x3f7   : > { %p1062_p2 = scmp.ne.s32.totalorder %s788_s27, %s1061_s12  ;;  %s1160_s14 = smov [#allocation6]  }
 0x3f8   : > { %s1065_s13 = sshll.u32 %s1160_s14, 4  ;;  %s1066_s13 = int_to_ptr.vmem [resolvable:$false] %s1065_s13 }
 0x3f9   : > { %p1063_p4 = pnand %p1062_p2, %p1240_p3  ;;  %s1067_s15 = scalar_lea.vmem %s1066_s13, 256 }
 0x3fa   : > { %p1068_p6 = scmp.lt.s32.totalorder %s788_s27, %s1066_s13  ;;  %p1069_p7 = scmp.lt.s32.totalorder %s1067_s15, %s1061_s12 }
 0x3fb   : > { %p1064_p5 = pneg %p1063_p4 }
 0x3fc   : > { %p1070_p8 = por %p1069_p7, %p1068_p6 }
 0x3fe   : > { %p1071_p10 = pnand %p1070_p8, %p1064_p5 }
 0x400   : > { %1074 = shalt.err (!%p1071_p10)
}
 0x401   : > { %s1075_s22 = scalar_lea.hbm %s785_s21, 128  ;;  %s1079_s24 = scalar_lea.hbm %s1370_s5, 256 }
 0x402   : > { %p1076_p11 = scmp.ne.s32.totalorder %s785_s21, %s1075_s22  ;;  %p1080_p0 = scmp.lt.s32.totalorder %s785_s21, %s1370_s5 }
 0x403   : > { %p1081_p1 = scmp.lt.s32.totalorder %s1079_s24, %s1075_s22 }
 0x404   : > { %p1077_p12 = pnand %p1076_p11, %p1240_p3 }
 0x405   : > { %p1082_p2 = por %p1081_p1, %p1080_p0 }
 0x406   : > { %p1078_p13 = pneg %p1077_p12 }
 0x408   : > { %p1083_p4 = pnand %p1082_p2, %p1078_p13 }
 0x40a   : > { %1086 = shalt.err (!%p1083_p4)
}
 0x40b   : > { %977 = dma.vmem_to_hbm [thread:$0]  (%p1240_p3), %s788_s27, 128, %s785_s21, %s773_s8  }
 0x40c PF: > { %p983_p5 = scmp.ge.s32.totalorder %s1153_s25, 2  ;;  %s799_s10 = sand.u32 1, %s1125_s18  }
 0x40d   : > { %s800_s16 = scalar_lea.sflag [#allocation7], %s799_s10 }
 0x40e   : > { %p980_p6 = pnand %p983_p5, %p1250_p9 }
 0x410   : > { %p981_p7 = pneg %p980_p6 }
 0x412   : > { %1120 = dma.done.wait (%p981_p7), %s800_s16, 128  }
 0x413   : > { %1122 = vsyncadd (%p981_p7), %s800_s16, 4294967168  ;;  %s18_s25 = sadd.s32 1, %s1153_s25   ;;  %s1382_s21 = sld [smem:[#allocation9_spill]] }
 0x414   : > { %p15_p8 = scmp.ge.s32.totalorder %s18_s25, 10   ;;  %s1383_s22 = sld [smem:[#allocation10_spill]] }
 0x415   : > { %s1384_s23 = sld [smem:[#allocation11_spill]]  ;;  %s1386_s18 = smov %s1129_s19 }
 0x416   : > { %s1385_s24 = sld [smem:[#allocation12_spill]]  ;;  %s1387_s19 = smov %s1133_s20 }
 0x417   : > { %s1388_s20 = smov %s1258_s9  ;;  %17 = sbr.rel (!%p15_p8) target bundleno = 5 (0x5), region = 104 }
 0x41c   :  { %805 = vsyncpa [#allocation7], 1 }
 0x41d   :  { %807 = vsyncpa [#allocation7 + $0x1], 1 }

</bundles_post_ra>
